<compile_context>
chip_gen: v7x
topology: tpu7x:2x2x1
jax: 0.10.0
libtpu: 0.0.40
codegen_flags: <defaults>
</compile_context>

<pallas_src>
import math

import jax
import jax.numpy as jnp
from jax import lax
from jax.experimental import pallas as pl
from jax.experimental.pallas import tpu as pltpu

_VMEM_LIMIT = 32 * 1024 * 1024  # raise v5e's 16MiB scoped default, fits v7x 64MiB


def _pick_batch_tile(B, cap=256):
    """Largest multiple-of-8 divisor of B that is <= cap and yields >= 2 grid
    steps (so v7x's two TensorCores both get work); otherwise the whole batch."""
    for t in range(min(cap, B // 2), 7, -1):
        if B % t == 0 and t % 8 == 0:
            return t
    return B


# ----------------------------------------------------------------------------
# In-kernel building blocks (values / refs already resident in VMEM)
# ----------------------------------------------------------------------------
def _ln(x3, g_ref, b_ref):
    """Annotated-transformer LayerNorm: unbiased std, eps added to std."""
    d = x3.shape[-1]
    mean = jnp.mean(x3, axis=-1, keepdims=True)
    xm = x3 - mean
    var = jnp.sum(xm * xm, axis=-1, keepdims=True) * (1.0 / (d - 1))
    inv = pl.reciprocal(jnp.sqrt(var) + 1e-6, approx=True)      # EUP, frees VALU
    return g_ref[...][None] * xm * inv + b_ref[...][None]


def _attend(q2, k2, v2, wo_ref, bo_ref, tb, t, nheads, causal):
    """q2/k2/v2: (tb*t, D) already projected.  Heads are merged by accumulating
    per-head partial products into the output projection (no lane concat)."""
    d = q2.shape[-1]
    dh = d // nheads
    q2 = q2 * (1.0 / math.sqrt(dh))                 # fold scale into q (cheap)
    if causal:
        row = lax.broadcasted_iota(jnp.int32, (t, t), 0)
        col = lax.broadcasted_iota(jnp.int32, (t, t), 1)
        keep = (col <= row)[None]                   # (1, t, t) generated in-kernel
    wo = wo_ref[...]
    acc = None
    for hh in range(nheads):                        # static loop, h is small
        sl = slice(hh * dh, (hh + 1) * dh)
        qh = q2[:, sl].reshape(tb, t, dh)
        kh = k2[:, sl].reshape(tb, t, dh)
        vh = v2[:, sl].reshape(tb, t, dh)
        s = jnp.einsum("bqd,bkd->bqk", qh, kh, preferred_element_type=jnp.float32)
        if causal:
            s = jnp.where(keep, s, -1e9)
        m = jnp.max(s, axis=-1, keepdims=True)
        p = jnp.exp(s - m)
        p = p * pl.reciprocal(jnp.sum(p, axis=-1, keepdims=True), approx=True)
        oh = jnp.einsum("bqk,bkd->bqd", p, vh, preferred_element_type=jnp.float32)
        part = jnp.dot(oh.reshape(tb * t, dh), wo[sl, :],
                       preferred_element_type=jnp.float32)
        acc = part if acc is None else acc + part
    out2 = acc + bo_ref[...]
    return out2.reshape(tb, t, d)


def _self_attention(y3, wqkv_ref, bqkv_ref, wo_ref, bo_ref, nheads, causal):
    tb, t, d = y3.shape
    y2 = y3.reshape(tb * t, d)
    qkv = jnp.dot(y2, wqkv_ref[...], preferred_element_type=jnp.float32) + bqkv_ref[...]
    return _attend(qkv[:, :d], qkv[:, d:2 * d], qkv[:, 2 * d:],
                   wo_ref, bo_ref, tb, t, nheads, causal)


def _cross_attention(y3, mem3, wq_ref, bq_ref, wkv_ref, bkv_ref,
                     wo_ref, bo_ref, nheads):
    tb, t, d = y3.shape
    q = jnp.dot(y3.reshape(tb * t, d), wq_ref[...],
                preferred_element_type=jnp.float32) + bq_ref[...]
    kv = jnp.dot(mem3.reshape(tb * t, d), wkv_ref[...],
                 preferred_element_type=jnp.float32) + bkv_ref[...]
    return _attend(q, kv[:, :d], kv[:, d:], wo_ref, bo_ref, tb, t, nheads, False)


def _ffn(y3, w1_ref, b1_ref, w2_ref, b2_ref):
    tb, t, d = y3.shape
    y2 = y3.reshape(tb * t, d)
    hid = jnp.maximum(
        jnp.dot(y2, w1_ref[...], preferred_element_type=jnp.float32) + b1_ref[...], 0.0)
    out = jnp.dot(hid, w2_ref[...], preferred_element_type=jnp.float32) + b2_ref[...]
    return out.reshape(tb, t, d)


# ----------------------------------------------------------------------------
# Fused Pallas kernels
# ----------------------------------------------------------------------------
def _embed_kernel(src_ref, tgt_ref, sw_ref, sb_ref, tw_ref, tb_ref, pe_ref,
                  x_ref, y_ref):
    src = src_ref[...]                               # (TB, T, k+1)
    tb, t, k1 = src.shape
    d = sw_ref.shape[1]
    pe = pe_ref[...][None]                           # (1, T, D)
    x2 = jnp.dot(src.reshape(tb * t, k1), sw_ref[...],
                 preferred_element_type=jnp.float32) + sb_ref[...]
    x_ref[...] = x2.reshape(tb, t, d) + pe
    # tgt embedding has d_in = 1 -> pure VPU broadcast (no 1-lane matmul).
    y_ref[...] = tgt_ref[...] * tw_ref[...][None] + tb_ref[...][None] + pe


def _make_enc_layer_kernel(nheads, final_norm):
    def kernel(x_ref, ln1g, ln1b, wqkv, bqkv, wo, bo,
               ln2g, ln2b, w1, b1, w2, b2, *rest):
        if final_norm:
            fng, fnb, o_ref = rest
        else:
            (o_ref,) = rest
        x = x_ref[...]
        x = x + _self_attention(_ln(x, ln1g, ln1b), wqkv, bqkv, wo, bo, nheads, False)
        x = x + _ffn(_ln(x, ln2g, ln2b), w1, b1, w2, b2)
        if final_norm:                               # encoder-final LN fused in
            x = _ln(x, fng, fnb)
        o_ref[...] = x
    return kernel


def _make_dec_layer_kernel(nheads, final):
    def kernel(y_ref, mem_ref, ln1g, ln1b, wqkv, bqkv, wo1, bo1,
               ln2g, ln2b, wqc, bqc, wkvc, bkvc, wo2, bo2,
               ln3g, ln3b, w1, b1, w2, b2, *rest):
        if final:
            fng, fnb, genw, genb, o_ref = rest       # o_ref: (TB, T)
        else:
            (o_ref,) = rest                          # o_ref: (TB, T, D)
        x = y_ref[...]
        mem = mem_ref[...]
        x = x + _self_attention(_ln(x, ln1g, ln1b), wqkv, bqkv, wo1, bo1, nheads, True)
        x = x + _cross_attention(_ln(x, ln2g, ln2b), mem, wqc, bqc, wkvc, bkvc,
                                 wo2, bo2, nheads)
        x = x + _ffn(_ln(x, ln3g, ln3b), w1, b1, w2, b2)
        if final:                                    # decoder-final LN + generator
            z = _ln(x, fng, fnb)
            o_ref[...] = jnp.sum(z * genw[...][None], axis=-1) + genb[...]
        else:
            o_ref[...] = x
    return kernel


def _cos_adj_kernel(f_ref, o_ref):
    f = f_ref[0]                                     # (N, feat)
    fn = f * lax.rsqrt(jnp.sum(f * f, axis=-1, keepdims=True) + 1e-24)
    # contract last axes of both operands -> no explicit transpose before MXU
    o_ref[0] = lax.dot_general(fn, fn, (((1,), (1,)), ((), ())),
                               preferred_element_type=jnp.float32)


def cosine_adjacency(feats):
    """feats: (bs, N, D) -> adj: (bs, N, N) cosine similarity per batch."""
    bs, n, d = feats.shape
    return pl.pallas_call(
        _cos_adj_kernel,
        grid=(bs,),
        in_specs=[pl.BlockSpec((1, n, d), lambda b: (b, 0, 0))],
        out_specs=pl.BlockSpec((1, n, n), lambda b: (b, 0, 0)),
        out_shape=jax.ShapeDtypeStruct((bs, n, n), jnp.float32),
        compiler_params=pltpu.CompilerParams(dimension_semantics=("parallel",)),
    )(feats.astype(jnp.float32))


# ----------------------------------------------------------------------------
# Temporal transformer (make_model reconstruction) -- fused per-layer launches
# ----------------------------------------------------------------------------
def c_temporal_forward(p, src, tgt, h):
    """src: (B, T, k+1), tgt: (B, T, 1) -> (B, T)."""
    B, T, K1 = src.shape
    D = p["src_emb_w"].shape[1]
    dff = p["enc_layers"][0]["ff"]["w1"].shape[1]
    assert D % h == 0
    # TODO(synk): reshapes inside the kernels assume T (len_closeness) is a
    #             multiple of 8 for layout-free collapse; T=8 here.
    TB = _pick_batch_tile(B)
    grid = (B // TB,)
    cp = pltpu.CompilerParams(dimension_semantics=("parallel",),
                              vmem_limit_bytes=_VMEM_LIMIT)

    def bspec(shape):                     # batch-tiled over leading dim
        zeros = (0,) * (len(shape) - 1)
        return pl.BlockSpec((TB,) + tuple(shape[1:]), lambda i, _z=zeros: (i,) + _z)

    def wspec(shape):                     # resident (whole-array) weight block
        zeros = (0,) * len(shape)
        return pl.BlockSpec(tuple(shape), lambda i, _z=zeros: _z)

    pe = p["pe"][:T]

    # ---- fused src/tgt embeddings + positional encoding (1 launch) ----------
    x, y = pl.pallas_call(
        _embed_kernel,
        grid=grid,
        in_specs=[bspec(src.shape), bspec(tgt.shape),
                  wspec((K1, D)), wspec((1, D)),
                  wspec((1, D)), wspec((1, D)),
                  wspec((T, D))],
        out_specs=[bspec((B, T, D)), bspec((B, T, D))],
        out_shape=[jax.ShapeDtypeStruct((B, T, D), jnp.float32),
                   jax.ShapeDtypeStruct((B, T, D), jnp.float32)],
        compiler_params=cp,
    )(src.astype(jnp.float32), tgt.astype(jnp.float32),
      p["src_emb_w"], p["src_emb_b"].reshape(1, D),
      p["tgt_emb_w"].reshape(1, D), p["tgt_emb_b"].reshape(1, D), pe)

    # ---- encoder stack (last layer also applies the encoder LayerNorm) ------
    n_enc = len(p["enc_layers"])
    for li, lp in enumerate(p["enc_layers"]):
        final = li == n_enc - 1
        ins = [x,
               lp["ln1_g"].reshape(1, D), lp["ln1_b"].reshape(1, D),
               lp["self_attn"]["wqkv"], lp["self_attn"]["bqkv"].reshape(1, 3 * D),
               lp["self_attn"]["wo"], lp["self_attn"]["bo"].reshape(1, D),
               lp["ln2_g"].reshape(1, D), lp["ln2_b"].reshape(1, D),
               lp["ff"]["w1"], lp["ff"]["b1"].reshape(1, dff),
               lp["ff"]["w2"], lp["ff"]["b2"].reshape(1, D)]
        specs = [bspec((B, T, D)),
                 wspec((1, D)), wspec((1, D)),
                 wspec((D, 3 * D)), wspec((1, 3 * D)),
                 wspec((D, D)), wspec((1, D)),
                 wspec((1, D)), wspec((1, D)),
                 wspec((D, dff)), wspec((1, dff)),
                 wspec((dff, D)), wspec((1, D))]
        if final:
            ins += [p["enc_norm_g"].reshape(1, D), p["enc_norm_b"].reshape(1, D)]
            specs += [wspec((1, D)), wspec((1, D))]
        x = pl.pallas_call(
            _make_enc_layer_kernel(h, final),
            grid=grid, in_specs=specs,
            out_specs=bspec((B, T, D)),
            out_shape=jax.ShapeDtypeStruct((B, T, D), jnp.float32),
            compiler_params=cp,
        )(*ins)
    memory = x

    # ---- decoder stack (last layer also applies final LN + generator) -------
    n_dec = len(p["dec_layers"])
    out = y
    for li, lp in enumerate(p["dec_layers"]):
        final = li == n_dec - 1
        ins = [out, memory,
               lp["ln1_g"].reshape(1, D), lp["ln1_b"].reshape(1, D),
               lp["self_attn"]["wqkv"], lp["self_attn"]["bqkv"].reshape(1, 3 * D),
               lp["self_attn"]["wo"], lp["self_attn"]["bo"].reshape(1, D),
               lp["ln2_g"].reshape(1, D), lp["ln2_b"].reshape(1, D),
               lp["src_attn"]["wq"], lp["src_attn"]["bq"].reshape(1, D),
               lp["src_attn"]["wkv"], lp["src_attn"]["bkv"].reshape(1, 2 * D),
               lp["src_attn"]["wo"], lp["src_attn"]["bo"].reshape(1, D),
               lp["ln3_g"].reshape(1, D), lp["ln3_b"].reshape(1, D),
               lp["ff"]["w1"], lp["ff"]["b1"].reshape(1, dff),
               lp["ff"]["w2"], lp["ff"]["b2"].reshape(1, D)]
        specs = [bspec((B, T, D)), bspec((B, T, D)),
                 wspec((1, D)), wspec((1, D)),
                 wspec((D, 3 * D)), wspec((1, 3 * D)),
                 wspec((D, D)), wspec((1, D)),
                 wspec((1, D)), wspec((1, D)),
                 wspec((D, D)), wspec((1, D)),
                 wspec((D, 2 * D)), wspec((1, 2 * D)),
                 wspec((D, D)), wspec((1, D)),
                 wspec((1, D)), wspec((1, D)),
                 wspec((D, dff)), wspec((1, dff)),
                 wspec((dff, D)), wspec((1, D))]
        if final:
            ins += [p["dec_norm_g"].reshape(1, D), p["dec_norm_b"].reshape(1, D),
                    p["gen_w"].reshape(1, D), p["gen_b"].reshape(1, 1)]
            specs += [wspec((1, D)), wspec((1, D)), wspec((1, D)), wspec((1, 1))]
            out_spec = bspec((B, T))
            out_shape = jax.ShapeDtypeStruct((B, T), jnp.float32)
        else:
            out_spec = bspec((B, T, D))
            out_shape = jax.ShapeDtypeStruct((B, T, D), jnp.float32)
        out = pl.pallas_call(
            _make_dec_layer_kernel(h, final),
            grid=grid, in_specs=specs,
            out_specs=out_spec, out_shape=out_shape,
            compiler_params=cp,
        )(*ins)
    return out  # (B, T)


# ----------------------------------------------------------------------------
# close.forward
# ----------------------------------------------------------------------------
def close_forward(params, x_c, mode="cos", adj=None, index=None):
    """x_c: (bs, closeness, 2, N) -> sq_c: (bs, N, closeness)."""
    k = params["k"]
    h = params["h"]
    bs, t, _, n = x_c.shape

    sx_c = jnp.transpose(x_c, (0, 2, 3, 1)).astype(jnp.float32)      # (bs, 2, N, T)

    if adj is None:
        feats = jnp.transpose(sx_c, (0, 2, 1, 3)).reshape(bs, n, -1)  # (bs, N, 2T)
        if mode == "corr":
            feats = feats - jnp.mean(feats, axis=-1, keepdims=True)   # Pearson corr
        elif mode != "cos":
            raise Exception("wrong adj mode")
        adj = cosine_adjacency(feats)

    if index is None:
        index = jnp.argsort(-adj, axis=-1)[:, :, :k]                  # top-k (desc)

    sx0 = sx_c[:, 0]                                                  # (bs, N, T)
    # gather of neighbour series stays in plain JAX (no clean Pallas equivalent)
    selected = jax.vmap(lambda s0, idx: s0[idx])(sx0, index)          # (bs, N, k, T)

    tx_c = jnp.concatenate(
        [sx0[..., None], jnp.swapaxes(selected, -1, -2)], axis=-1)    # (bs, N, T, k+1)
    tgt_c = jnp.mean(tx_c, axis=3, keepdims=True)                     # (bs, N, T, 1)

    src = tx_c.reshape(bs * n, t, k + 1)
    tgt = tgt_c.reshape(bs * n, t, 1)
    out = c_temporal_forward(params["c_temporal"], src, tgt, h)       # (bs*N, T)
    return out.reshape(bs, n, t)


# ----------------------------------------------------------------------------
# Deterministic parameter init (fused qkv / kv weights for the kernels)
# ----------------------------------------------------------------------------
def _positional_encoding(max_len, d_model):
    pos = jnp.arange(max_len, dtype=jnp.float32)[:, None]
    div = jnp.exp(
        jnp.arange(0, d_model, 2, dtype=jnp.float32) * (-math.log(10000.0) / d_model))
    pe = jnp.zeros((max_len, d_model), jnp.float32)
    pe = pe.at[:, 0::2].set(jnp.sin(pos * div))
    pe = pe.at[:, 1::2].set(jnp.cos(pos * div))
    return pe


def _dense_init(key, din, dout):
    k1, k2 = jax.random.split(key)
    bound = 1.0 / math.sqrt(din)
    w = jax.random.uniform(k1, (din, dout), jnp.float32, -bound, bound)
    b = jax.random.uniform(k2, (dout,), jnp.float32, -bound, bound)
    return w, b


def _attn_params(key, d_model):
    ws = {}
    for name, kk in zip(("q", "k", "v", "o"), jax.random.split(key, 4)):
        w, b = _dense_init(kk, d_model, d_model)
        ws["w" + name] = w
        ws["b" + name] = b
    return {
        "wqkv": jnp.concatenate([ws["wq"], ws["wk"], ws["wv"]], axis=1),
        "bqkv": jnp.concatenate([ws["bq"], ws["bk"], ws["bv"]], axis=0),
        "wq": ws["wq"], "bq": ws["bq"],
        "wkv": jnp.concatenate([ws["wk"], ws["wv"]], axis=1),
        "bkv": jnp.concatenate([ws["bk"], ws["bv"]], axis=0),
        "wo": ws["wo"], "bo": ws["bo"],
    }


def _ff_params(key, d_model, d_ff):
    k1, k2 = jax.random.split(key)
    w1, b1 = _dense_init(k1, d_model, d_ff)
    w2, b2 = _dense_init(k2, d_ff, d_model)
    return {"w1": w1, "b1": b1, "w2": w2, "b2": b2}


def init_close_params(key, k, n_layers, d_model, h, d_ff, max_len):
    keys = jax.random.split(key, 5)
    src_w, src_b = _dense_init(keys[0], k + 1, d_model)
    tgt_w, tgt_b = _dense_init(keys[1], 1, d_model)
    gen_w, gen_b = _dense_init(keys[2], d_model, 1)

    ones = lambda: jnp.ones((d_model,), jnp.float32)
    zeros = lambda: jnp.zeros((d_model,), jnp.float32)

    enc_layers = []
    for lk in jax.random.split(keys[3], n_layers):
        k1, k2 = jax.random.split(lk)
        enc_layers.append({
            "self_attn": _attn_params(k1, d_model),
            "ff": _ff_params(k2, d_model, d_ff),
            "ln1_g": ones(), "ln1_b": zeros(),
            "ln2_g": ones(), "ln2_b": zeros(),
        })

    dec_layers = []
    for lk in jax.random.split(keys[4], n_layers):
        k1, k2, k3 = jax.random.split(lk, 3)
        dec_layers.append({
            "self_attn": _attn_params(k1, d_model),
            "src_attn": _attn_params(k2, d_model),
            "ff": _ff_params(k3, d_model, d_ff),
            "ln1_g": ones(), "ln1_b": zeros(),
            "ln2_g": ones(), "ln2_b": zeros(),
            "ln3_g": ones(), "ln3_b": zeros(),
        })

    c_temporal = {
        "src_emb_w": src_w, "src_emb_b": src_b,
        "tgt_emb_w": tgt_w, "tgt_emb_b": tgt_b,
        "gen_w": gen_w, "gen_b": gen_b,
        "enc_layers": enc_layers, "dec_layers": dec_layers,
        "enc_norm_g": ones(), "enc_norm_b": zeros(),
        "dec_norm_g": ones(), "dec_norm_b": zeros(),
        "pe": _positional_encoding(max_len, d_model),
    }
    return {"k": k, "h": h, "c_temporal": c_temporal}


# ----------------------------------------------------------------------------
if __name__ == "__main__":
    bs, closeness, channels, n_nodes = 2, 8, 2, 16
    k, n_layers, d_model, heads, d_ff = 3, 2, 32, 4, 64

    key = jax.random.PRNGKey(0)
    pkey, xkey = jax.random.split(key)

    params = init_close_params(
        pkey, k=k, n_layers=n_layers, d_model=d_model, h=heads, d_ff=d_ff,
        max_len=closeness,
    )
    x_c = jax.random.normal(xkey, (bs, closeness, channels, n_nodes), jnp.float32)

    sq_c = close_forward(params, x_c, mode="cos")
    sq_c = jax.block_until_ready(sq_c)

    assert sq_c.shape == (bs, n_nodes, closeness), sq_c.shape
    assert sq_c.dtype == jnp.float32
    assert bool(jnp.all(jnp.isfinite(sq_c)))
    print("KERNEL_OK")
</pallas_src>

<mosaic_0001>
module attributes {stable_mosaic.version = 11 : i64} {
  func.func @_cos_adj_kernel(%arg0: i32, %arg1: memref<1x16x16xf32, #tpu.memory_space<vmem>>, %arg2: memref<1x16x16xf32, #tpu.memory_space<vmem>>) attributes {dimension_semantics = [#tpu.dimension_semantics<parallel>], iteration_bounds = array<i64: 2>, scalar_prefetch = 0 : i64, scratch_operands = 0 : i64, tpu.core_type = #tpu.core_type<tc>, window_params = [{transform_indices = @transform_0, window_bounds = array<i64: 1, 16, 16>}, {transform_indices = @transform_1, window_bounds = array<i64: 1, 16, 16>}]} {
    %c0 = arith.constant 0 : index
    %c0_0 = arith.constant 0 : index
    %c0_1 = arith.constant 0 : index
    %0 = vector.load %arg1[%c0, %c0_0, %c0_1] : memref<1x16x16xf32, #tpu.memory_space<vmem>>, vector<1x16x16xf32>
    %1 = vector.shape_cast %0 : vector<1x16x16xf32> to vector<16x16xf32>
    %2 = arith.mulf %1, %1 : vector<16x16xf32>
    %cst = arith.constant dense<0.000000e+00> : vector<16xf32>
    %3 = vector.multi_reduction <add>, %2, %cst [1] : vector<16x16xf32> to vector<16xf32>
    %4 = vector.shape_cast %3 : vector<16xf32> to vector<16x1xf32>
    %cst_2 = arith.constant 1.000000e-24 : f32
    %5 = vector.broadcast %cst_2 : f32 to vector<16x1xf32>
    %6 = arith.addf %4, %5 : vector<16x1xf32>
    %7 = math.rsqrt %6 : vector<16x1xf32>
    %8 = vector.broadcast %7 : vector<16x1xf32> to vector<16x16xf32>
    %9 = arith.mulf %1, %8 : vector<16x16xf32>
    %cst_3 = arith.constant dense<0.000000e+00> : vector<16x16xf32>
    %10 = tpu.matmul %9, %9, %cst_3 {dimension_numbers = #tpu.dot_dimension_numbers<[1], [1], [0], [0], [0, 0, 1, 0], [], []>} : vector<16x16xf32>, vector<16x16xf32>, vector<16x16xf32> -> vector<16x16xf32>
    %c0_4 = arith.constant 0 : index
    %c0_5 = arith.constant 0 : index
    %c0_6 = arith.constant 0 : index
    %11 = vector.load %arg2[%c0_4, %c0_5, %c0_6] : memref<1x16x16xf32, #tpu.memory_space<vmem>>, vector<1x16x16xf32>
    %12 = vector.shape_cast %11 : vector<1x16x16xf32> to vector<16x16xf32>
    %13 = vector.shape_cast %10 : vector<16x16xf32> to vector<1x16x16xf32>
    tpu.vector_store %arg2[%c0_4, %c0_5, %c0_6], %13 {strides = array<i32>} : memref<1x16x16xf32, #tpu.memory_space<vmem>>, vector<1x16x16xf32>,
    return
  }
  func.func @transform_0(%arg0: i32) -> (i32, i32, i32) {
    %c0_i32 = arith.constant 0 : i32
    %c0_i32_0 = arith.constant 0 : i32
    %c0_i32_1 = arith.constant 0 : i32
    return %arg0, %c0_i32, %c0_i32_0 : i32, i32, i32
  }
  func.func @transform_1(%arg0: i32) -> (i32, i32, i32) {
    %c0_i32 = arith.constant 0 : i32
    %c0_i32_0 = arith.constant 0 : i32
    %c0_i32_1 = arith.constant 0 : i32
    return %arg0, %c0_i32, %c0_i32_0 : i32, i32, i32
  }
}

</mosaic_0001>

<bundles_post_ra>
// kernel: tpu_custom_call.1
= control target key start
LH: loop header
LB: loop body
LE: loop exit
PB: predicated region body
PF: predicated region fallthrough
CT: control target
= control target key end

     0   :  { %6 = vsyncpa [#allocation3], 0  ;;  %s697_s0 = inlined_call_operand.hbm [shape: f32[2,16,16], index: 0, kind: input, shape index: {}]   ;;  %s698_s1 = inlined_call_operand.hbm [shape: f32[2,16,16], index: 1, kind: output, shape index: {}]  }
   0x1   :  { %8 = vsyncpa [#allocation3 + $0x1], 0 }
   0x2   :  { %9 = vsyncpa [#allocation4], 0 }
   0x3   :  { %11 = vsyncpa [#allocation4 + $0x1], 0  ;;  %s527_s6 = smov 0   ;;  %s529_s7 = smov 0  }
   0x4   :  { %s531_s8 = smov 0   ;;  %s533_s9 = smov 0  }
   0x5 LB: > { %s548_s10 = sadd.s32 4294967295, %s509_s9   ;;  %s322_s11 = sadd.s32 4294967294, %s509_s9   ;;  %s509_s9 = sphi %s533_s9, %s711_s9   ;;  %s505_s8 = sphi %s531_s8, %s710_s8   ;;  %s501_s7 = sphi %s529_s7, %s709_s7   ;;  %s497_s6 = sphi %s527_s6, %s708_s6  }
   0x6   : > { %s552_s12 = sadd.s32 1, %s509_s9   ;;  %s24_s13 = sadd.s32 1, %s505_s8 }
   0x7   : > { %s21_s14 = ssub.s32 %s509_s9, %s552_s12  ;;  %p31_p0 = scmp.ne.s32.totalorder %s505_s8, %s501_s7 }
   0x8   : > { %p22_p1 = scmp.eq.s32.totalorder %s21_s14, 0  ;;  %p32_p2 = scmp.eq.s32.totalorder %s509_s9, 0 }
   0x9   : > { %p37_p3 = scmp.ne.s32.totalorder %s501_s7, %s497_s6  ;;  %p38_p4 = scmp.eq.s32.totalorder %s548_s10, 0 }
   0xa   : > { %s564_s15 = scalar_select %p22_p1, %s505_s8, %s24_s13  }
   0xb   : > { %p566_p5 = por %p32_p2, %p31_p0  ;;  %p570_p6 = por %p38_p4, %p37_p3 }
   0xc   : > { %p61_p7 = scmp.eq.s32.totalorder %s548_s10, 1  ;;  %p67_p8 = scmp.eq.s32.totalorder %s322_s11, 1 }
   0xd   : > { %p371_p10 = scmp.lt.s32.totalorder %s509_s9, 2  ;;  %s87_s20 = sand.u32 1, %s505_s8  }
   0xe   : > { %p577_p11 = por %p61_p7, %p31_p0  ;;  %p581_p12 = por %p67_p8, %p37_p3 }
   0xf   : > { %s340_s21 = sshll.u32 %s509_s9, 8  ;;  %s325_s22 = sshll.u32 %s87_s20, 4 }
  0x10   : > { %s702_s18 = scalar_select %p577_p11, 1, 0 }
  0x11   : > { %s703_s19 = scalar_select %p581_p12, 1, 0 }
  0x12   : > { %s590_s25 = scalar_lea.hbm %s697_s0, %s340_s21  ;;  %s91_s26 = scalar_lea.vmem [#allocation2], %s325_s22 }
  0x13   : > { %s98_s27 = sshll.u32 %s91_s26, 4  ;;  %p594_p13 = pnand %p371_p10, %p566_p5  ;;  %s598_s27 = int_to_ptr.vmem [resolvable:$true] %s98_s27 }
  0x14   : > { %s600_s29 = scalar_lea.sflag [#allocation3], %s87_s20  ;;  %s413_s30 = scalar_lea.hbm %s590_s25, 256 }
  0x15   : > { %p414_p0 = scmp.ne.s32.totalorder %s590_s25, %s413_s30  ;;  %p415_p1 = pneg %p594_p13 }
  0x16   : > { %s418_s4 = scalar_lea.hbm %s697_s0, 512  ;;  %p419_p4 = scmp.lt.u32.totalorder %s590_s25, %s697_s0 }
  0x17   : > { %p416_p2 = pnand %p415_p1, %p414_p0  ;;  %p420_p5 = scmp.lt.u32.totalorder %s418_s4, %s413_s30 }
  0x18   : > { %p422_p8 = scmp.lt.u32.totalorder %s413_s30, %s590_s25 }
  0x19   : > { %p417_p3 = pneg %p416_p2  ;;  %p421_p7 = por %p420_p5, %p419_p4 }
  0x1b   : > { %p423_p10 = por %p422_p8, %p421_p7 }
  0x1d   : > { %p424_p9 = pnand %p423_p10, %p417_p3 }
  0x1f   : > { %427 = shalt.err (!%p424_p9)
}
  0x20   : > { %s428_s13 = scalar_lea.vmem %s598_s27, 256  ;;  %s511_s14 = smov [#allocation2]  }
  0x21   : > { %p429_p0 = scmp.ne.s32.totalorder %s598_s27, %s428_s13  ;;  %s433_s16 = sshll.u32 %s511_s14, 4  ;;  %s434_s16 = int_to_ptr.vmem [resolvable:$false] %s433_s16 }
  0x22   : > { %s435_s20 = scalar_lea.vmem %s434_s16, 512  ;;  %p436_p11 = scmp.lt.s32.totalorder %s598_s27, %s434_s16 }
  0x23   : > { %p431_p2 = pnand %p429_p0, %p415_p1  ;;  %p437_p4 = scmp.lt.s32.totalorder %s435_s20, %s428_s13 }
  0x25   : > { %p432_p12 = pneg %p431_p2  ;;  %p438_p5 = por %p437_p4, %p436_p11 }
  0x27   : > { %p439_p7 = pnand %p438_p5, %p432_p12 }
  0x29   : > { %442 = shalt.err (!%p439_p7)
}
  0x2a   : > { %s512_s21 = smov 128   ;;  %s513_s22 = smov 8  }
  0x2b   : > { %366 = dma.hbm_to_vmem [thread:$0]  (!%p594_p13), %s590_s25, 256, %s598_s27, %s600_s29, %s512_s21, %s512_s21, %s513_s22  }
  0x2c   : > { %p328_p9 = scmp.ge.s32.totalorder %s509_s9, 1  ;;  %p106_p1 = scmp.lt.s32.totalorder %s509_s9, 3 }
  0x2e   : > { %p107_p3 = pnand %p328_p9, %p106_p1 }
  0x2f   : > { %s631_s23 = sand.u32 (!%p107_p3), 1, %s501_s7  }
  0x30   : > { %110 = sbr.rel (%p107_p3) target bundleno = 459 (0x1cb), region = 24  ;;  %s329_s24 = sshll.u32 (!%p107_p3), %s631_s23, 4 }
  0x31   : > { %s113_s26 = scalar_lea.sflag (!%p107_p3), [#allocation3], %s631_s23  ;;  %s116_s30 = scalar_lea.vmem (!%p107_p3), [#allocation2], %s329_s24 }
  0x37   : > { %488 = dma.done.wait (%p570_p6), %s113_s26, 256  }
  0x38   : > { %490 = vsyncadd (%p570_p6), %s113_s26, 4294967040  ;;  %v135_v0 = vld [vmem:[%s116_s30] sm:$0xff]  ;;  %vm139_vm0 = vcmask 130048   ;;  %v136_v1 = vld [vmem:[%s116_s30 + $0x8] sm:$0xff]  ;;  %s134_s17 = scalar_lea.vmem [#allocation5], %s329_s24  ;;  %s341_s27 = sshll.u32 %s548_s10, 8 }
  0x39   : > { %v137_v2 = vmul.f32 %v135_v0, %v135_v0  ;;  %v138_v3 = vmul.f32 %v136_v1, %v136_v1  ;;  %vm354_vm1 = vmpackc.low %vm139_vm0, %vm139_vm0  ;;  %s249_s25 = sshll.u32 %s134_s17, 4  ;;  %s651_s2 = scalar_lea.hbm %s698_s1, %s341_s27  ;;  %s646_s25 = int_to_ptr.vmem [resolvable:$true] %s249_s25 }
  0x3a   : > { %s236_s3 = scalar_lea.sflag [#allocation4], %s631_s23  ;;  %s443_s4 = scalar_lea.vmem %s646_s25, 256 }
  0x3b   : > { %v140_v4 = vsel %vm139_vm0, %v137_v2, 0.0  ;;  %v143_v5 = vsel %vm139_vm0, %v138_v3, 0.0  ;;  %p444_p6 = scmp.ne.s32.totalorder %s646_s25, %s443_s4  ;;  %p705_p11 = scmp.ne.s32.totalorder %s702_s18, 0 }
  0x3c   : > { %141 = vadd.xlane.f32.xlu0 %v140_v4  ;;  %s514_s10 = smov [#allocation5]  }
  0x3d   : > { %p445_p12 = pnand %p444_p6, %p705_p11  ;;  %s447_s5 = sshll.u32 %s514_s10, 4  ;;  %s448_s5 = int_to_ptr.vmem [resolvable:$false] %s447_s5 }
  0x3e   : > { %s449_s11 = scalar_lea.vmem %s448_s5, 512  ;;  %p450_p8 = scmp.lt.s32.totalorder %s646_s25, %s448_s5 }
  0x3f   : > { %p446_p13 = pneg %p445_p12  ;;  %p451_p10 = scmp.lt.s32.totalorder %s449_s11, %s443_s4 }
  0x40   : > { %144 = vadd.xlane.f32.xlu0 %v143_v5 }
  0x41   : > { %p452_p0 = por %p451_p10, %p450_p8 }
  0x43   : > { %p453_p2 = pnand %p452_p0, %p446_p13 }
  0xc9   : > { %v142_v6 = vpop.xlane.xlu0 %141 }
  0xca   : > { %v146_v7 = vadd.f32 1e-24, %v142_v6 }
  0xcc   : > { %409 = vrsqrt.f32 %v146_v7 }
  0xcd   : > { %v145_v8 = vpop.xlane.xlu0 %144 }
  0xce   : > { %v147_v9 = vadd.f32 1e-24, %v145_v8 }
  0xd0   : > { %411 = vrsqrt.f32 %v147_v9 }
  0xd6   : > { %v410_v10 = vpop.eup %409 }
  0xd7   : > { %v150_v11 = vmul.f32 %v410_v10, %v135_v0 }
  0xd9   : > { %350 = vmatprep.mubr.msk.f32.mxu0 %vm139_vm0, %v150_v11 }
  0xda   : > { %v412_v12 = vpop.eup %411 }
  0xdb   : > { %v151_v13 = vmul.f32 %v412_v12, %v136_v1 }
  0xdd   : > { %v353_v14 = vpack.c.bf16 %v151_v13, %v150_v11 }
  0xdf   : > { %355 = vmatprep.subr.msk.bf16.mxu0 %vm354_vm1, %v353_v14 }
  0xe0   : > { %358 = vmatpush3.bf16.xpose.msk.msra.mxu0 %vm354_vm1, %v353_v14 }
  0xe7   : > { %351 = vmatmul.mubr.msk.f32.vlgmr.msra.gmra.mrb[0].mxu0 %vm139_vm0, %v151_v13 }
 0x1ba   : > { %v352_v15 = vpop.f32.mrb[0].mxu0 }
 0x1bb   : > { %234 = vst.msk [vmem:[%s134_s17 + $0x8] sm:$0xff] %vm139_vm0, %v352_v15  ;;  %v224_v16 = vpop.f32.mrb[1].mxu0 }
 0x1bc   : > { %233 = vst.msk [vmem:[%s134_s17] sm:$0xff] %vm139_vm0, %v224_v16 }
 0x1bd   : > { %456 = shalt.err (!%p453_p2)
}
 0x1be   : > { %s457_s13 = scalar_lea.hbm %s651_s2, 256  ;;  %s461_s20 = scalar_lea.hbm %s698_s1, 512 }
 0x1bf   : > { %p458_p4 = scmp.ne.s32.totalorder %s651_s2, %s457_s13  ;;  %p462_p9 = scmp.lt.u32.totalorder %s651_s2, %s698_s1 }
 0x1c0   : > { %p463_p1 = scmp.lt.u32.totalorder %s461_s20, %s457_s13  ;;  %p465_p6 = scmp.lt.u32.totalorder %s457_s13, %s651_s2 }
 0x1c1   : > { %p459_p5 = pnand %p458_p4, %p705_p11 }
 0x1c2   : > { %p464_p3 = por %p463_p1, %p462_p9 }
 0x1c3   : > { %p460_p7 = pneg %p459_p5 }
 0x1c4   : > { %p466_p12 = por %p465_p6, %p464_p3 }
 0x1c6   : > { %p467_p13 = pnand %p466_p12, %p460_p7 }
 0x1c8   : > { %470 = shalt.err (!%p467_p13)
}
 0x1c9   : > { %s515_s24 = smov 128   ;;  %s516_s26 = smov 8  }
 0x1ca   : > { %361 = dma.vmem_to_hbm [thread:$0]  (%p705_p11), %s646_s25, 256, %s651_s2, %s236_s3, %s515_s24, %s515_s24, %s516_s26  }
 0x1cb PF: > { %s264_s30 = sand.u32 1, %s497_s6   ;;  %p706_p8 = scmp.ne.s32.totalorder %s703_s19, 0 }
 0x1cc   : > { %p707_p10 = scmp.ge.s32.totalorder %s509_s9, 2  ;;  %s265_s17 = scalar_lea.sflag [#allocation4], %s264_s30 }
 0x1ce   : > { %p368_p0 = pnand %p707_p10, %p706_p8 }
 0x1d0   : > { %492 = dma.done.wait (!%p368_p0), %s265_s17, 256  }
 0x1d1   : > { %494 = vsyncadd (!%p368_p0), %s265_s17, 4294967040  ;;  %p14_p2 = scmp.ge.s32.totalorder %s552_s12, 4   ;;  %s708_s6 = smov %s501_s7 }
 0x1d2   : > { %s709_s7 = smov %s505_s8  ;;  %s710_s8 = smov %s564_s15 }
 0x1d3   : > { %s711_s9 = smov %s552_s12  ;;  %16 = sbr.rel (!%p14_p2) target bundleno = 5 (0x5), region = 69 }
 0x1da   :  { %270 = vsyncpa [#allocation3], 1 }
 0x1db   :  { %272 = vsyncpa [#allocation3 + $0x1], 1 }
 0x1dc   :  { %273 = vsyncpa [#allocation4], 1 }
 0x1dd   :  { %275 = vsyncpa [#allocation4 + $0x1], 1 }

</bundles_post_ra>
